<compile_context>
chip_gen: v7x
topology: tpu7x:2x2x1
jax: 0.10.0
libtpu: 0.0.40
codegen_flags: <defaults>
</compile_context>

<pallas_src>
import functools

import jax
import jax.numpy as jnp
from jax.experimental import pallas as pl
from jax.experimental.pallas import tpu as pltpu


# --------------------------------------------------------------------------- #
# Kernel 1: raw input-moment (Gram) accumulation over all B*H*W pixels.
# --------------------------------------------------------------------------- #
def _xmoment_kernel(x_ref, gxx_ref, sum_ref, gxx_sc, sum_sc,
                    *, hw, tp, npc, need_mask):
    p = pl.program_id(2)

    @pl.when(p == 0)
    def _():
        gxx_sc[...] = jnp.zeros_like(gxx_sc)
        sum_sc[...] = jnp.zeros_like(sum_sc)

    x = x_ref[0]                                            # (Cs, TP), native dtype
    if need_mask:
        start = (pl.program_id(1) * npc + p) * tp
        lane = jax.lax.broadcasted_iota(jnp.int32, x.shape, 1)
        x = jnp.where(lane + start < hw, x, jnp.zeros_like(x))

    # Gxx += x @ x^T : contraction over the large lane/pixel dim (MXU, f32 acc)
    gxx_sc[...] += jax.lax.dot_general(
        x, x, (((1,), (1,)), ((), ())), preferred_element_type=jnp.float32)
    sum_sc[...] += jnp.sum(x.astype(jnp.float32), axis=1, keepdims=True)

    @pl.when(p == pl.num_programs(2) - 1)
    def _():
        gxx_ref[0, 0] = gxx_sc[...]
        sum_ref[0, 0] = sum_sc[...]


def _student_input_moments(x3):
    """Returns (Gxx = sum_p x_p x_p^T  (Cs,Cs),  Sx = sum_p x_p  (Cs,))."""
    B, Cs, HW = x3.shape

    if HW < 128:
        TP = HW                                    # single full (unaligned) block
    else:
        TP = min(1024, (HW // 128) * 128)          # lane-aligned, <= HW
    n_pt = pl.cdiv(HW, TP)
    need_mask = (HW % TP) != 0

    # v7x megacore: when B alone cannot feed both TensorCores, split the pixel
    # block axis into 2 parallel chunks (partial moments summed in the wrapper).
    PC = 2 if (B == 1 and n_pt >= 2 and n_pt % 2 == 0) else 1
    npc = n_pt // PC

    gxx, sx = pl.pallas_call(
        functools.partial(_xmoment_kernel, hw=HW, tp=TP, npc=npc,
                          need_mask=need_mask),
        grid=(B, PC, npc),
        in_specs=[pl.BlockSpec((1, Cs, TP), lambda b, c, p: (b, 0, c * npc + p))],
        out_specs=[pl.BlockSpec((1, 1, Cs, Cs), lambda b, c, p: (b, c, 0, 0)),
                   pl.BlockSpec((1, 1, Cs, 1), lambda b, c, p: (b, c, 0, 0))],
        out_shape=(jax.ShapeDtypeStruct((B, PC, Cs, Cs), jnp.float32),
                   jax.ShapeDtypeStruct((B, PC, Cs, 1), jnp.float32)),
        scratch_shapes=[pltpu.VMEM((Cs, Cs), jnp.float32),
                        pltpu.VMEM((Cs, 1), jnp.float32)],
        compiler_params=pltpu.CompilerParams(
            dimension_semantics=("parallel", "parallel", "arbitrary")),
    )(x3)

    return jnp.sum(gxx, axis=(0, 1)), jnp.sum(sx, axis=(0, 1))[:, 0]


# --------------------------------------------------------------------------- #
# Kernel 2: everything on the K sampled pixels, fully fused in VMEM.
# TODO(synk): for production B*K*Ct this should be gridded over B with
# online-softmax-style accumulators to stay within v7x's 64 MiB VMEM.
# --------------------------------------------------------------------------- #
def _fused_sampled_kernel(ts_ref, xs_ref, w1_ref, w2_ref, scale_ref, shift_ref,
                          o_ref, *, temperature, stride, B, K):
    eps_sq = jnp.float32(1e-24)   # == F.normalize eps (1e-12) applied to the norm

    # teacher: per-pixel L2 normalize over channels
    t = ts_ref[...].astype(jnp.float32)                                 # (B, K, Ct)
    tn = t * jax.lax.rsqrt(
        jnp.maximum(jnp.sum(t * t, axis=-1, keepdims=True), eps_sq))

    # student: conv1 -> BN (folded affine) -> ReLU -> conv2 -> L2 normalize
    y1 = jnp.dot(xs_ref[...], w1_ref[...],
                 preferred_element_type=jnp.float32)                    # (B*K, Ct)
    h = jnp.maximum(y1 * scale_ref[...] + shift_ref[...], 0.0)
    z = jnp.dot(h, w2_ref[...], preferred_element_type=jnp.float32)     # (B*K, Ct)
    sn = z * jax.lax.rsqrt(
        jnp.maximum(jnp.sum(z * z, axis=-1, keepdims=True), eps_sq))
    sn = sn.reshape(B, K, -1)                                           # (B, K, Ct)

    # Transposed per-image Gram rows: only the first `stride` sampled pixels
    # ever index Gram rows in the reference; the global softmax/KL below is
    # invariant to the transpose, and K as the streamed M dim fills the MXU.
    g_tt = jnp.einsum('bkc,brc->bkr', tn, tn[:, :stride, :],
                      preferred_element_type=jnp.float32)               # (B, K, stride)
    g_ss = jnp.einsum('bkc,brc->bkr', sn, sn[:, :stride, :],
                      preferred_element_type=jnp.float32)

    # KL(softmax(tt/T) || softmax(ss/T)) over all B*stride*K elements,
    # reduction='batchmean' (divide by the flattened length), * T^2.
    inv_t = jnp.float32(1.0 / temperature)
    tt = g_tt.reshape(B * K, stride) * inv_t
    ss = g_ss.reshape(B * K, stride) * inv_t
    m_tt = jnp.max(tt)
    m_ss = jnp.max(ss)
    e_tt = jnp.exp(tt - m_tt)
    z_tt = jnp.sum(e_tt)
    log_z_tt = jnp.log(z_tt)
    log_z_ss = jnp.log(jnp.sum(jnp.exp(ss - m_ss)))
    diff = (tt - m_tt - log_z_tt) - (ss - m_ss - log_z_ss)   # log p - log q
    n = B * stride * K
    loss = (jnp.sum(e_tt * diff) / z_tt) * jnp.float32(temperature * temperature / n)
    o_ref[...] = jnp.full((1, 1), loss, dtype=jnp.float32)


# ------------------------------ Forward wrapper ----------------------------- #
def gskdb_forward(s_feats, t_feats, w1, w2, gamma, beta, *, temperature, N, S, key):
    B, Cs, H, W = s_feats.shape
    _, Ct, _, _ = t_feats.shape
    HW = H * W

    # free reshapes (NCHW -> (B, C, HW)); feature maps stay in their native dtype
    x3 = s_feats.reshape(B, Cs, HW)
    t3 = t_feats.reshape(B, Ct, HW)

    w1_cm = w1[:, :, 0, 0].astype(jnp.float32)        # (Ct, Cs), channel-major conv1
    w2_t = w2[:, :, 0, 0].astype(jnp.float32).T       # (Ct, Ct)

    # SyncBatchNorm batch statistics (training mode, world size 1) recovered
    # exactly from the raw input moments: mean = W1 Sx / n, E[y^2] = diag(W1 Gxx W1^T)/n
    Gxx, Sx = _student_input_moments(x3)
    total = jnp.float32(B * HW)
    mean = (w1_cm @ Sx) / total                                          # (Ct,)
    ey2 = jnp.sum((w1_cm @ Gxx) * w1_cm, axis=1) / total                 # (Ct,)
    var = jnp.maximum(ey2 - mean * mean, 0.0)     # biased, as BN forward
    scale = gamma.astype(jnp.float32) / jnp.sqrt(var + 1e-5)
    shift = beta.astype(jnp.float32) - mean * scale

    # sample K = N*S pixels; everything downstream only reads these pixels
    # TODO(synk): fold this gather into the Pallas call (PrefetchScalarGridSpec
    # with perm in SMEM) to avoid the wrapper-side (B,K,C) materializations.
    K = N * S
    perm = jax.random.permutation(key, HW)[:K]
    t_s = jnp.transpose(jnp.take(t3, perm, axis=2), (0, 2, 1))           # (B, K, Ct)
    x_s = jnp.transpose(jnp.take(x3, perm, axis=2), (0, 2, 1)).reshape(B * K, Cs)

    # image_sub_desc stride handling
    if S < 0:
        stride = int(-1 * S * Ct)
    else:
        stride = int(S)
    # TODO(synk): stride == 0 branch and the K % stride != 0 remainder branch of
    # the reference are not implemented (the latter reshapes to a wrong size for B > 1).
    assert stride > 0 and K % stride == 0, "only stride>0 with K % stride == 0 supported"

    loss = pl.pallas_call(
        functools.partial(_fused_sampled_kernel, temperature=float(temperature),
                          stride=stride, B=B, K=K),
        out_shape=jax.ShapeDtypeStruct((1, 1), jnp.float32),
    )(t_s, x_s, w1_cm.T, w2_t, scale.reshape(1, Ct), shift.reshape(1, Ct))
    return loss[0, 0]


# ---------------------------------- main ----------------------------------- #
if __name__ == "__main__":
    key = jax.random.PRNGKey(0)
    B, Cs, Ct, H, W = 2, 4, 8, 8, 8        # s_channel=4, t_channel=8, spatial 8x8
    temperature, N, S = 4.0, 2, 8          # K = N*S = 16 sampled pixels, stride = 8

    k1, k2, k3, k4, k5 = jax.random.split(key, 5)
    s_feats = jax.random.normal(k1, (B, Cs, H, W), jnp.float32)
    t_feats = jax.random.normal(k2, (B, Ct, H, W), jnp.float32)

    # deterministic synthetic parameters (shapes from the module __init__)
    w1 = jax.random.normal(k3, (Ct, Cs, 1, 1), jnp.float32) * 0.2   # conv1 weight
    w2 = jax.random.normal(k4, (Ct, Ct, 1, 1), jnp.float32) * 0.2   # conv2 weight
    gamma = jnp.ones((Ct,), jnp.float32)    # BN weight
    beta = jnp.zeros((Ct,), jnp.float32)    # BN bias

    loss = gskdb_forward(s_feats, t_feats, w1, w2, gamma, beta,
                         temperature=temperature, N=N, S=S, key=k5)
    jax.block_until_ready(loss)
    print("KERNEL_OK")
</pallas_src>

<mosaic_0001>
module attributes {stable_mosaic.version = 11 : i64} {
  func.func @_xmoment_kernel(%arg0: i32, %arg1: i32, %arg2: i32, %arg3: memref<1x4x64xf32, #tpu.memory_space<vmem>>, %arg4: memref<1x1x4x4xf32, #tpu.memory_space<vmem>>, %arg5: memref<1x1x4x1xf32, #tpu.memory_space<vmem>>, %arg6: memref<4x4xf32, #tpu.memory_space<vmem>>, %arg7: memref<4x1xf32, #tpu.memory_space<vmem>>) attributes {dimension_semantics = [#tpu.dimension_semantics<parallel>, #tpu.dimension_semantics<parallel>, #tpu.dimension_semantics<arbitrary>], iteration_bounds = array<i64: 2, 1, 1>, scalar_prefetch = 0 : i64, scratch_operands = 2 : i64, tpu.core_type = #tpu.core_type<tc>, window_params = [{transform_indices = @transform_0, window_bounds = array<i64: 1, 4, 64>}, {transform_indices = @transform_1, window_bounds = array<i64: 1, 1, 4, 4>}, {transform_indices = @transform_2, window_bounds = array<i64: 1, 1, 4, 1>}]} {
    %c0_i32 = arith.constant 0 : i32
    %0 = arith.cmpi eq, %arg2, %c0_i32 : i32
    %1 = arith.extui %0 : i1 to i32
    %c0_i32_0 = arith.constant 0 : i32
    %2 = arith.cmpi ne, %1, %c0_i32_0 : i32
    scf.if %2 {
      %cst_14 = arith.constant 0.000000e+00 : f32
      %17 = vector.broadcast %cst_14 : f32 to vector<4x4xf32>
      %c0_15 = arith.constant 0 : index
      %c0_16 = arith.constant 0 : index
      %18 = vector.load %arg6[%c0_15, %c0_16] : memref<4x4xf32, #tpu.memory_space<vmem>>, vector<4x4xf32>
      tpu.vector_store %arg6[%c0_15, %c0_16], %17 {strides = array<i32>} : memref<4x4xf32, #tpu.memory_space<vmem>>, vector<4x4xf32>,
      %cst_17 = arith.constant 0.000000e+00 : f32
      %19 = vector.broadcast %cst_17 : f32 to vector<4x1xf32>
      %c0_18 = arith.constant 0 : index
      %c0_19 = arith.constant 0 : index
      %20 = vector.load %arg7[%c0_18, %c0_19] : memref<4x1xf32, #tpu.memory_space<vmem>>, vector<4x1xf32>
      tpu.vector_store %arg7[%c0_18, %c0_19], %19 {strides = array<i32>} : memref<4x1xf32, #tpu.memory_space<vmem>>, vector<4x1xf32>,
    } else {
    }
    %c0 = arith.constant 0 : index
    %c0_1 = arith.constant 0 : index
    %c0_2 = arith.constant 0 : index
    %3 = vector.load %arg3[%c0, %c0_1, %c0_2] : memref<1x4x64xf32, #tpu.memory_space<vmem>>, vector<1x4x64xf32>
    %4 = vector.shape_cast %3 : vector<1x4x64xf32> to vector<4x64xf32>
    %c0_3 = arith.constant 0 : index
    %c0_4 = arith.constant 0 : index
    %5 = vector.load %arg6[%c0_3, %c0_4] : memref<4x4xf32, #tpu.memory_space<vmem>>, vector<4x4xf32>
    %cst = arith.constant dense<0.000000e+00> : vector<4x4xf32>
    %6 = tpu.matmul %4, %4, %cst {dimension_numbers = #tpu.dot_dimension_numbers<[1], [1], [0], [0], [0, 0, 1, 0], [], []>} : vector<4x64xf32>, vector<4x64xf32>, vector<4x4xf32> -> vector<4x4xf32>
    %7 = arith.addf %5, %6 : vector<4x4xf32>
    %c0_5 = arith.constant 0 : index
    %c0_6 = arith.constant 0 : index
    %8 = vector.load %arg6[%c0_5, %c0_6] : memref<4x4xf32, #tpu.memory_space<vmem>>, vector<4x4xf32>
    tpu.vector_store %arg6[%c0_5, %c0_6], %7 {strides = array<i32>} : memref<4x4xf32, #tpu.memory_space<vmem>>, vector<4x4xf32>,
    %c0_7 = arith.constant 0 : index
    %c0_8 = arith.constant 0 : index
    %9 = vector.load %arg7[%c0_7, %c0_8] : memref<4x1xf32, #tpu.memory_space<vmem>>, vector<4x1xf32>
    %cst_9 = arith.constant dense<0.000000e+00> : vector<4xf32>
    %10 = vector.multi_reduction <add>, %4, %cst_9 [1] : vector<4x64xf32> to vector<4xf32>
    %11 = vector.shape_cast %10 : vector<4xf32> to vector<4x1xf32>
    %12 = arith.addf %9, %11 : vector<4x1xf32>
    %c0_10 = arith.constant 0 : index
    %c0_11 = arith.constant 0 : index
    %13 = vector.load %arg7[%c0_10, %c0_11] : memref<4x1xf32, #tpu.memory_space<vmem>>, vector<4x1xf32>
    tpu.vector_store %arg7[%c0_10, %c0_11], %12 {strides = array<i32>} : memref<4x1xf32, #tpu.memory_space<vmem>>, vector<4x1xf32>,
    %c0_i32_12 = arith.constant 0 : i32
    %14 = arith.cmpi eq, %arg2, %c0_i32_12 : i32
    %15 = arith.extui %14 : i1 to i32
    %c0_i32_13 = arith.constant 0 : i32
    %16 = arith.cmpi ne, %15, %c0_i32_13 : i32
    scf.if %16 {
      %c0_14 = arith.constant 0 : index
      %c0_15 = arith.constant 0 : index
      %17 = vector.load %arg6[%c0_14, %c0_15] : memref<4x4xf32, #tpu.memory_space<vmem>>, vector<4x4xf32>
      %c0_16 = arith.constant 0 : index
      %c0_17 = arith.constant 0 : index
      %c0_18 = arith.constant 0 : index
      %c0_19 = arith.constant 0 : index
      %18 = vector.load %arg4[%c0_16, %c0_17, %c0_18, %c0_19] : memref<1x1x4x4xf32, #tpu.memory_space<vmem>>, vector<1x1x4x4xf32>
      %19 = vector.shape_cast %18 : vector<1x1x4x4xf32> to vector<4x4xf32>
      %20 = vector.shape_cast %17 : vector<4x4xf32> to vector<1x1x4x4xf32>
      tpu.vector_store %arg4[%c0_16, %c0_17, %c0_18, %c0_19], %20 {strides = array<i32>} : memref<1x1x4x4xf32, #tpu.memory_space<vmem>>, vector<1x1x4x4xf32>,
      %c0_20 = arith.constant 0 : index
      %c0_21 = arith.constant 0 : index
      %21 = vector.load %arg7[%c0_20, %c0_21] : memref<4x1xf32, #tpu.memory_space<vmem>>, vector<4x1xf32>
      %c0_22 = arith.constant 0 : index
      %c0_23 = arith.constant 0 : index
      %c0_24 = arith.constant 0 : index
      %c0_25 = arith.constant 0 : index
      %22 = vector.load %arg5[%c0_22, %c0_23, %c0_24, %c0_25] : memref<1x1x4x1xf32, #tpu.memory_space<vmem>>, vector<1x1x4x1xf32>
      %23 = vector.shape_cast %22 : vector<1x1x4x1xf32> to vector<4x1xf32>
      %24 = vector.shape_cast %21 : vector<4x1xf32> to vector<1x1x4x1xf32>
      tpu.vector_store %arg5[%c0_22, %c0_23, %c0_24, %c0_25], %24 {strides = array<i32>} : memref<1x1x4x1xf32, #tpu.memory_space<vmem>>, vector<1x1x4x1xf32>,
    } else {
    }
    return
  }
  func.func @transform_0(%arg0: i32, %arg1: i32, %arg2: i32) -> (i32, i32, i32) {
    %c1_i32 = arith.constant 1 : i32
    %0 = arith.muli %arg1, %c1_i32 : i32
    %1 = arith.addi %0, %arg2 : i32
    %c0_i32 = arith.constant 0 : i32
    %c0_i32_0 = arith.constant 0 : i32
    return %arg0, %c0_i32, %1 : i32, i32, i32
  }
  func.func @transform_1(%arg0: i32, %arg1: i32, %arg2: i32) -> (i32, i32, i32, i32) {
    %c0_i32 = arith.constant 0 : i32
    %c0_i32_0 = arith.constant 0 : i32
    %c0_i32_1 = arith.constant 0 : i32
    return %arg0, %arg1, %c0_i32, %c0_i32_0 : i32, i32, i32, i32
  }
  func.func @transform_2(%arg0: i32, %arg1: i32, %arg2: i32) -> (i32, i32, i32, i32) {
    %c0_i32 = arith.constant 0 : i32
    %c0_i32_0 = arith.constant 0 : i32
    %c0_i32_1 = arith.constant 0 : i32
    return %arg0, %arg1, %c0_i32, %c0_i32_0 : i32, i32, i32, i32
  }
}

</mosaic_0001>

<bundles_post_ra>
// kernel: tpu_custom_call.1
= control target key start
LH: loop header
LB: loop body
LE: loop exit
PB: predicated region body
PF: predicated region fallthrough
CT: control target
= control target key end

     0   :  { %8 = vsyncpa [#allocation5], 0  ;;  %s855_s0 = inlined_call_operand.hbm [shape: f32[2,4,64], index: 0, kind: input, shape index: {}]   ;;  %s856_s1 = inlined_call_operand.hbm [shape: f32[2,1,4,4], index: 1, kind: output, shape index: {0}]   ;;  %s857_s2 = inlined_call_operand.vmem [shape: f32[2,1,4,1], index: 2, kind: output, shape index: {1}]  }
   0x1   :  { %10 = vsyncpa [#allocation5 + $0x1], 0 }
   0x2   :  { %11 = vsyncpa [#allocation6], 0 }
   0x3   :  { %13 = vsyncpa [#allocation6 + $0x1], 0  ;;  %s668_s9 = smov 0   ;;  %s670_s10 = smov 0  }
   0x4   :  { %s672_s11 = smov 0   ;;  %s674_s12 = smov 0  }
   0x5   :  { %s676_s13 = smov 0   ;;  %s678_s14 = smov 0  }
   0x6 LB: > { %s448_s15 = sadd.s32 4294967295, %s647_s14   ;;  %s449_s16 = sadd.s32 4294967294, %s647_s14   ;;  %s647_s14 = sphi %s678_s14, %s19_s14   ;;  %s643_s13 = sphi %s676_s13, %s873_s13   ;;  %s639_s12 = sphi %s674_s12, %s872_s12   ;;  %s635_s11 = sphi %s672_s11, %s871_s11   ;;  %s631_s10 = sphi %s670_s10, %s870_s10   ;;  %s627_s9 = sphi %s668_s9, %s869_s9  }
   0x7   : > { %s38_s17 = sadd.s32 1, %s643_s13  ;;  %s49_s18 = sadd.s32 1, %s635_s11 }
   0x8   : > { %p40_p0 = scmp.ge.s32.totalorder %s38_s17, 2  ;;  %p56_p1 = scmp.ne.s32.totalorder %s635_s11, %s631_s10 }
   0x9   : > { %p57_p2 = scmp.eq.s32.totalorder %s647_s14, 0  ;;  %p62_p3 = scmp.ne.s32.totalorder %s631_s10, %s627_s9 }
   0xa   : > { %s875_s17 = smov (%p40_p0, %s38_s17), 0  ;;  %p63_p5 = scmp.eq.s32.totalorder %s448_s15, 0 }
   0xb   : > { %p709_p4 = por %p57_p2, %p56_p1  ;;  %s44_s20 = ssub.s32 %s643_s13, %s875_s17 }
   0xc   : > { %p88_p6 = scmp.eq.s32.totalorder %s448_s15, 1  ;;  %p47_p7 = scmp.eq.s32.totalorder %s44_s20, 0 }
   0xd   : > { %p715_p8 = por %p63_p5, %p62_p3  ;;  %p94_p10 = scmp.eq.s32.totalorder %s449_s16, 1 }
   0xe   : > { %p719_p9 = por %p88_p6, %p56_p1  ;;  %p483_p13 = scmp.lt.s32.totalorder %s647_s14, 2 }
   0xf   : > { %s724_s23 = scalar_select %p47_p7, %s635_s11, %s49_s18  }
  0x10   : > { %s861_s22 = scalar_select %p719_p9, 1, 0 }
  0x11   : > { %p726_p11 = por %p94_p10, %p62_p3  ;;  %s142_s25 = sand.u32 1, %s635_s11  }
  0x12   : > { %s452_s26 = sshll.u32 %s142_s25, 2  ;;  %s453_s27 = sshll.u32 %s643_s13, 6 }
  0x13   : > { %s862_s24 = scalar_select %p726_p11, 1, 0 }
  0x14   : > { %s737_s30 = scalar_lea.hbm %s855_s0, %s453_s27  ;;  %s146_s3 = scalar_lea.vmem [#allocation4], %s452_s26 }
  0x15   : > { %s155_s4 = sshll.u32 %s146_s3, 4  ;;  %p743_p0 = pnand %p483_p13, %p709_p4  ;;  %s739_s4 = int_to_ptr.vmem [resolvable:$true] %s155_s4 }
  0x16   : > { %s143_s6 = scalar_lea.sflag [#allocation5], %s142_s25  ;;  %s535_s7 = scalar_lea.hbm %s737_s30, 64 }
  0x17   : > { %p536_p3 = scmp.ne.s32.totalorder %s737_s30, %s535_s7  ;;  %p537_p5 = pneg %p743_p0 }
  0x18   : > { %s540_s16 = scalar_lea.hbm %s855_s0, 128  ;;  %p541_p4 = scmp.lt.u32.totalorder %s737_s30, %s855_s0 }
  0x19   : > { %p538_p6 = pnand %p537_p5, %p536_p3  ;;  %p542_p10 = scmp.lt.u32.totalorder %s540_s16, %s535_s7 }
  0x1a   : > { %p544_p12 = scmp.lt.u32.totalorder %s535_s7, %s737_s30 }
  0x1b   : > { %p539_p7 = pneg %p538_p6  ;;  %p543_p13 = por %p542_p10, %p541_p4 }
  0x1d   : > { %p545_p1 = por %p544_p12, %p543_p13 }
  0x1f   : > { %p546_p2 = pnand %p545_p1, %p539_p7 }
  0x21   : > { %549 = shalt.err (!%p546_p2)
}
  0x22   : > { %s550_s20 = scalar_lea.vmem %s739_s4, 64  ;;  %s649_s25 = smov [#allocation4]  }
  0x23   : > { %p551_p3 = scmp.ne.s32.totalorder %s739_s4, %s550_s20  ;;  %s555_s26 = sshll.u32 %s649_s25, 4  ;;  %s556_s26 = int_to_ptr.vmem [resolvable:$false] %s555_s26 }
  0x24   : > { %s557_s27 = scalar_lea.vmem %s556_s26, 128  ;;  %p558_p9 = scmp.lt.s32.totalorder %s739_s4, %s556_s26 }
  0x25   : > { %p553_p6 = pnand %p551_p3, %p537_p5  ;;  %p559_p4 = scmp.lt.s32.totalorder %s557_s27, %s550_s20 }
  0x27   : > { %p554_p11 = pneg %p553_p6  ;;  %p560_p10 = por %p559_p4, %p558_p9 }
  0x29   : > { %p561_p12 = pnand %p560_p10, %p554_p11 }
  0x2b   : > { %564 = shalt.err (!%p561_p12)
}
  0x2c   : > { %478 = dma.hbm_to_vmem [thread:$0]  (!%p743_p0), %s737_s30, 64, %s739_s4, %s143_s6  }
  0x2d   : > { %p864_p1 = scmp.lt.s32.totalorder %s647_s14, 3  ;;  %p865_p2 = scmp.ge.s32.totalorder %s647_s14, 1 }
  0x2f   : > { %p161_p5 = pnand %p865_p2, %p864_p1 }
  0x30   : > { %s779_s28 = sand.u32 (!%p161_p5), 1, %s631_s10  }
  0x31   : > { %164 = sbr.rel (%p161_p5) target bundleno = 298 (0x12a), region = 24  ;;  %s455_s29 = sshll.u32 (!%p161_p5), %s779_s28, 2 }
  0x32   : > { %s167_s3 = scalar_lea.sflag (!%p161_p5), [#allocation5], %s779_s28  ;;  %s170_s5 = scalar_lea.vmem (!%p161_p5), [#allocation4], %s455_s29 }
  0x38   : > { %618 = dma.done.wait (%p715_p8), %s167_s3, 64  }
  0x39   : > { %620 = vsyncadd (%p715_p8), %s167_s3, 4294967232  ;;  %vm210_vm0 = vcmask 27648   ;;  %vm212_vm1 = vcmask 3072   ;;  %v650_v0 = vmov 0.0   ;;  %vm651_vm2 = vmmov 0   ;;  %p199_p8 = scmp.lt.s32.totalorder %s639_s12, 1 }
  0x3a   : > { %211 = vst.msk [vmem:[#allocation2] sm:$0xf] %vm210_vm0, %v650_v0  ;;  %466 = vmatprep.subr.mxu0 %v650_v0  ;;  %468 = vmatprep.mubr.msk.f32.mxu0 %vm651_vm2, %v650_v0  ;;  %vm216_vm3 = vcmask 523264   ;;  %vm294_vm4 = vcmask 519168   ;;  %v214_v1 = vld [vmem:[%s170_s5] sm:$0xf] }
  0x3b   : > { %213 = vst.msk [vmem:[#allocation3] sm:$0xf] %vm212_vm1, %v650_v0  ;;  %467 = vmatpush3.xpose.msk.msra.mxu0 %vm216_vm3, %v214_v1  ;;  %v295_v2 = vsel %vm294_vm4, %v214_v1, 0.0  ;;  %s200_s21 = scalar_select %p199_p8, %s639_s12, 1 }
  0x3c   : > { %296 = vadd.xlane.f32.xlu0 %v295_v2  ;;  %s461_s8 = sshll.u32 %s639_s12, 6  ;;  %s188_s15 = scalar_lea.vmem [#allocation7], %s455_s29 }
  0x3d   : > { %s457_s30 = sshll.u32 %s200_s21, 2  ;;  %s330_s16 = sshll.u32 %s188_s15, 4  ;;  %s807_s16 = int_to_ptr.vmem [resolvable:$true] %s330_s16 }
  0x3e   : > { %469 = vmatmul.mubr.msk.f32.vlgmr.msra.gmra.mrb[0].mxu0 %vm216_vm3, %v214_v1  ;;  %s205_s7 = scalar_lea.vmem %s857_s2, %s457_s30  ;;  %s805_s20 = scalar_lea.hbm %s856_s1, %s461_s8 }
  0x3f   : > { %s309_s25 = scalar_lea.sflag [#allocation6], %s779_s28  ;;  %s565_s26 = scalar_lea.vmem %s807_s16, 64 }
  0x40   : > { %p566_p9 = scmp.ne.s32.totalorder %s807_s16, %s565_s26  ;;  %p866_p11 = scmp.ne.s32.totalorder %s861_s22, 0 }
  0x41   : > { %v215_v7 = vld [vmem:[#allocation2] sm:$0xf]  ;;  %s652_s12 = smov [#allocation7]  }
  0x42   : > { %v293_v3 = vld [vmem:[#allocation3] sm:$0xf]  ;;  %p567_p0 = pnand %p566_p9, %p866_p11  ;;  %s569_s27 = sshll.u32 %s652_s12, 4  ;;  %s570_s27 = int_to_ptr.vmem [resolvable:$false] %s569_s27 }
  0x43   : > { %s571_s29 = scalar_lea.vmem %s570_s27, 128  ;;  %p572_p13 = scmp.lt.s32.totalorder %s807_s16, %s570_s27 }
  0x44   : > { %p568_p7 = pneg %p567_p0  ;;  %p573_p3 = scmp.lt.s32.totalorder %s571_s29, %s565_s26 }
  0x46   : > { %p574_p6 = por %p573_p3, %p572_p13 }
  0x48   : > { %p575_p4 = pnand %p574_p6, %p568_p7 }
  0xc9   : > { %v297_v4 = vpop.xlane.xlu0 %296 }
  0xca   : > { %v298_v5 = vadd.f32 %v297_v4, %v293_v3 }
  0xcc   : > { %300 = vst.msk [vmem:[#allocation3] sm:$0xf] %vm212_vm1, %v298_v5 }
  0xd3   : > { %v306_v6 = vld [vmem:[#allocation3] sm:$0xf] }
  0xd4   : > { %307 = vst.msk [vmem:[%s205_s7] sm:$0xf] %vm212_vm1, %v306_v6 }
 0x111   : > { %v286_v8 = vpop.f32.mrb[0].mxu0 }
 0x112   : > { %v290_v9 = vadd.f32 %v286_v8, %v215_v7  ;;  %v470_v10 = vpop.f32.mrb[1].mxu0 }
 0x114   : > { %292 = vst.msk [vmem:[#allocation2] sm:$0xf] %vm210_vm0, %v290_v9 }
 0x11b   : > { %v304_v11 = vld [vmem:[#allocation2] sm:$0xf] }
 0x11c   : > { %305 = vst.msk [vmem:[%s188_s15] sm:$0xf] %vm210_vm0, %v304_v11 }
 0x11d   : > { %578 = shalt.err (!%p575_p4)
}
 0x11e   : > { %s579_s28 = scalar_lea.hbm %s805_s20, 64  ;;  %s583_s21 = scalar_lea.hbm %s856_s1, 128 }
 0x11f   : > { %p580_p10 = scmp.ne.s32.totalorder %s805_s20, %s579_s28  ;;  %p584_p2 = scmp.lt.u32.totalorder %s805_s20, %s856_s1 }
 0x120   : > { %p585_p5 = scmp.lt.u32.totalorder %s583_s21, %s579_s28  ;;  %p587_p9 = scmp.lt.u32.totalorder %s579_s28, %s805_s20 }
 0x121   : > { %p581_p12 = pnand %p580_p10, %p866_p11 }
 0x122   : > { %p586_p8 = por %p585_p5, %p584_p2 }
 0x123   : > { %p582_p1 = pneg %p581_p12 }
 0x124   : > { %p588_p0 = por %p587_p9, %p586_p8 }
 0x126   : > { %p589_p7 = pnand %p588_p0, %p582_p1 }
 0x128   : > { %592 = shalt.err (!%p589_p7)
}
 0x129   : > { %473 = dma.vmem_to_hbm [thread:$0]  (%p866_p11), %s807_s16, 64, %s805_s20, %s309_s25  }
 0x12a PF: > { %s345_s6 = sand.u32 1, %s627_s9   ;;  %p867_p13 = scmp.ne.s32.totalorder %s862_s24, 0 }
 0x12b   : > { %p868_p3 = scmp.ge.s32.totalorder %s647_s14, 2  ;;  %s346_s7 = scalar_lea.sflag [#allocation6], %s345_s6 }
 0x12d   : > { %p480_p6 = pnand %p868_p3, %p867_p13 }
 0x12f   : > { %622 = dma.done.wait (!%p480_p6), %s346_s7, 64  }
 0x130   : > { %624 = vsyncadd (!%p480_p6), %s346_s7, 4294967232  ;;  %s19_s14 = sadd.s32 1, %s647_s14   ;;  %s869_s9 = smov %s631_s10 }
 0x131   : > { %p16_p4 = scmp.ge.s32.totalorder %s19_s14, 4   ;;  %s870_s10 = smov %s635_s11 }
 0x132   : > { %s871_s11 = smov %s724_s23  ;;  %s872_s12 = smov %s643_s13 }
 0x133   : > { %s873_s13 = smov %s875_s17  ;;  %18 = sbr.rel (!%p16_p4) target bundleno = 6 (0x6), region = 89 }
 0x13a   :  { %361 = vsyncpa [#allocation5], 1 }
 0x13b   :  { %363 = vsyncpa [#allocation5 + $0x1], 1 }
 0x13c   :  { %364 = vsyncpa [#allocation6], 1 }
 0x13d   :  { %366 = vsyncpa [#allocation6 + $0x1], 1 }

</bundles_post_ra>
